<compile_context>
chip_gen: v6e
topology: v6e:2x2x1
jax: 0.10.0
libtpu: 0.0.40
codegen_flags: <defaults>
</compile_context>

<pallas_src>
import functools

import jax
import jax.numpy as jnp
from jax.experimental import pallas as pl
from jax.experimental.pallas import tpu as pltpu


# ---------------------------------------------------------------------------
# VMEM sizing helpers
# ---------------------------------------------------------------------------

_TARGET_BLOCK_BYTES = 16 * 1024 * 1024      # aim for ~16 MiB input blocks
_MIN_SPLIT_BLOCK_BYTES = 2 * 1024 * 1024    # don't split below ~2 MiB blocks


def _round_up(a, b):
    return (a + b - 1) // b * b


def _sublane(itemsize):
    # Sub-32-bit dtypes pack along sublanes: f32 -> 8, bf16 -> 16, int8 -> 32.
    return 8 * max(1, 4 // itemsize)


def _padded_bytes(rows, cols, itemsize):
    """VMEM bytes of a 2-D tile once padded to the (sublane, 128-lane) grid."""
    return (_round_up(max(rows, 1), _sublane(itemsize))
            * _round_up(max(cols, 1), 128) * itemsize)


def _vmem_budgets():
    """(tiling budget, scoped vmem limit) for the current TPU generation."""
    try:
        cap = getattr(pltpu.get_tpu_info(), "vmem_capacity_bytes", None)
    except Exception:
        cap = None
    if cap is not None and cap >= 128 * 1024 * 1024:      # v5e / v6e
        return 88 * 1024 * 1024, 104 * 1024 * 1024
    return 40 * 1024 * 1024, 48 * 1024 * 1024             # v7x (64 MiB) / unknown


def _pick_tb(B, row_native, row_f32, fixed_bytes, budget):
    """Batch-tile size for the single-pass paths; 0 if one row doesn't fit.

    Per-row footprint: input + output blocks double-buffered (4x native) plus
    ~2 block-sized f32 temporaries (the promoted product before the downcast).
    """
    per_row = 4 * row_native + 2 * row_f32
    avail = budget - fixed_bytes
    if per_row <= 0 or avail < per_row:
        return 0
    max_tb = avail // per_row
    target_tb = max(1, _TARGET_BLOCK_BYTES // max(1, row_native))
    tb = int(min(B, max_tb, target_tb))
    if tb >= B and B >= 4:
        # Whole batch fits in one step: split into ~4 steps (2 per v7x core)
        # only if the blocks stay large enough to keep DMAs efficient.
        quarter = -(-B // 4)
        if quarter * row_native >= _MIN_SPLIT_BLOCK_BYTES:
            tb = quarter
    return max(tb, 1)


# ---------------------------------------------------------------------------
# Path A: batch-tiled 3-D kernel (W already lane-friendly, or C too large for
# the collapsed MXU-squeeze path).
# ---------------------------------------------------------------------------

def _se3d_kernel(x_ref, w1t_ref, b1_ref, w2t_ref, b2_ref, o_ref):
    # squeeze: sum over W in f32 (the mean's 1/W is folded into w1t).
    sq = jnp.sum(x_ref[...], axis=-1, dtype=jnp.float32)              # (tb, C)
    z1 = jnp.dot(sq, w1t_ref[...], preferred_element_type=jnp.float32)
    z1 = jnp.maximum(z1 + b1_ref[...], 0.0)                           # ReLU
    z2 = jnp.dot(z1, w2t_ref[...], preferred_element_type=jnp.float32)
    gate = jax.nn.sigmoid(z2 + b2_ref[...])                           # (tb, C) f32
    # Re-read x_ref so the slab's live range doesn't span the MLP; multiply in
    # f32 and cast only the product back to the input dtype.
    o_ref[...] = (x_ref[...] * gate[:, :, None]).astype(o_ref.dtype)


def _se_batched(x, w1t, b1r, w2t, b2r, tb, vmem_limit):
    B, C, W = x.shape
    Cr = w1t.shape[1]
    return pl.pallas_call(
        _se3d_kernel,
        out_shape=jax.ShapeDtypeStruct((B, C, W), x.dtype),
        grid=(pl.cdiv(B, tb),),
        in_specs=[
            pl.BlockSpec((tb, C, W), lambda b: (b, 0, 0)),
            pl.BlockSpec((C, Cr), lambda b: (0, 0)),
            pl.BlockSpec((1, Cr), lambda b: (0, 0)),
            pl.BlockSpec((Cr, C), lambda b: (0, 0)),
            pl.BlockSpec((1, C), lambda b: (0, 0)),
        ],
        out_specs=pl.BlockSpec((tb, C, W), lambda b: (b, 0, 0)),
        compiler_params=pltpu.CompilerParams(
            dimension_semantics=("parallel",),
            vmem_limit_bytes=vmem_limit),
    )(x, w1t, b1r, w2t, b2r)


# ---------------------------------------------------------------------------
# Path B: lane-dense collapsed kernel for lane-unfriendly W (W % 128 != 0).
# x is viewed as (B, C*W) (free reshape) so every load/store is dense; the
# squeeze over W and the per-channel gate broadcast are expressed as matmuls
# against a small block-structured 0/1 matrix S (C*W, C), keeping that work on
# the MXU instead of masked vst / cross-lane shuffles.
# ---------------------------------------------------------------------------

def _se2d_kernel(x_ref, s_ref, st_ref, w1t_ref, b1_ref, w2t_ref, b2_ref, o_ref):
    sq = jnp.dot(x_ref[...], s_ref[...],
                 preferred_element_type=jnp.float32)                  # (tb, C): sum over W
    z1 = jnp.dot(sq, w1t_ref[...], preferred_element_type=jnp.float32)
    z1 = jnp.maximum(z1 + b1_ref[...], 0.0)
    z2 = jnp.dot(z1, w2t_ref[...], preferred_element_type=jnp.float32)
    gate = jax.nn.sigmoid(z2 + b2_ref[...])                           # (tb, C) f32
    gate_full = jnp.dot(gate.astype(st_ref.dtype), st_ref[...],
                        preferred_element_type=jnp.float32)           # (tb, C*W)
    o_ref[...] = (x_ref[...] * gate_full).astype(o_ref.dtype)


def _se_collapsed(x, w1t, b1r, w2t, b2r, tb, vmem_limit):
    B, C, W = x.shape
    CW = C * W
    Cr = w1t.shape[1]
    x2 = x.reshape(B, CW)                       # contiguous collapse: free
    # S[c*W + w, c'] = 1 iff c' == c  ->  x2 @ S sums over W; gate @ S^T
    # repeats each channel's gate W times along the lane axis.
    s = jnp.repeat(jnp.eye(C, dtype=x.dtype), W, axis=0)              # (C*W, C)
    st = s.T                                                          # (C, C*W)
    out2 = pl.pallas_call(
        _se2d_kernel,
        out_shape=jax.ShapeDtypeStruct((B, CW), x.dtype),
        grid=(pl.cdiv(B, tb),),
        in_specs=[
            pl.BlockSpec((tb, CW), lambda b: (b, 0)),
            pl.BlockSpec((CW, C), lambda b: (0, 0)),
            pl.BlockSpec((C, CW), lambda b: (0, 0)),
            pl.BlockSpec((C, Cr), lambda b: (0, 0)),
            pl.BlockSpec((1, Cr), lambda b: (0, 0)),
            pl.BlockSpec((Cr, C), lambda b: (0, 0)),
            pl.BlockSpec((1, C), lambda b: (0, 0)),
        ],
        out_specs=pl.BlockSpec((tb, CW), lambda b: (b, 0)),
        compiler_params=pltpu.CompilerParams(
            dimension_semantics=("parallel",),
            vmem_limit_bytes=vmem_limit),
    )(x2, s, st, w1t, b1r, w2t, b2r)
    return out2.reshape(B, C, W)


# ---------------------------------------------------------------------------
# Path C: W-tiled two-pass fallback for rows too large to fit in VMEM.
#   pass 1: accumulate the squeeze over a trailing "arbitrary" W axis into the
#           resident (1, C, 1) gate block, apply the MLP at the last W step.
#   pass 2: re-stream x and scale it by the per-channel gate.
# ---------------------------------------------------------------------------

def _fb_gate_kernel(x_ref, w1t_ref, b1_ref, w2t_ref, b2_ref, gate_ref, *,
                    w_total, tw):
    wi = pl.program_id(1)
    x = x_ref[...]                                        # (1, C, tw)
    if w_total % tw:                                      # ragged last W block
        col = jax.lax.broadcasted_iota(jnp.int32, x.shape, 2)
        x = jnp.where(wi * tw + col < w_total, x, jnp.zeros_like(x))
    part = jnp.sum(x, axis=-1, keepdims=True, dtype=jnp.float32)      # (1, C, 1)

    @pl.when(wi == 0)
    def _():
        gate_ref[...] = part

    @pl.when(wi != 0)
    def _():
        gate_ref[...] = gate_ref[...] + part

    @pl.when(wi == pl.num_programs(1) - 1)
    def _():
        sq = gate_ref[...][:, :, 0]                                   # (1, C)
        z1 = jnp.dot(sq, w1t_ref[...], preferred_element_type=jnp.float32)
        z1 = jnp.maximum(z1 + b1_ref[...], 0.0)
        z2 = jnp.dot(z1, w2t_ref[...], preferred_element_type=jnp.float32)
        gate_ref[...] = jax.nn.sigmoid(z2 + b2_ref[...])[:, :, None]


def _fb_scale_kernel(gate_ref, x_ref, o_ref):
    o_ref[...] = (x_ref[...] * gate_ref[...]).astype(o_ref.dtype)


def _se_two_pass(x, w1t, b1r, w2t, b2r, budget, vmem_limit, weights_bytes):
    B, C, W = x.shape
    Cr = w1t.shape[1]
    it = x.dtype.itemsize
    # Size the W tile (multiple of 128 lanes, or all of W) so in+out blocks
    # (double-buffered) plus f32 temporaries of a (1, C, tw) slab fit.
    per_group = 4 * _padded_bytes(C, 128, it) + 2 * _padded_bytes(C, 128, 4)
    avail = max(budget - weights_bytes, per_group)
    n128 = max(1, avail // per_group)
    tw = min(W, n128 * 128)
    if tw < W:
        tw = max(128, (tw // 128) * 128)
    # TODO(synk): if C is so large that even a (1, C, 128) tile exceeds VMEM,
    # a C-tiled variant would be needed; not implemented here.
    nw = pl.cdiv(W, tw)

    gate = pl.pallas_call(
        functools.partial(_fb_gate_kernel, w_total=W, tw=tw),
        out_shape=jax.ShapeDtypeStruct((B, C, 1), jnp.float32),
        grid=(B, nw),
        in_specs=[
            pl.BlockSpec((1, C, tw), lambda b, w: (b, 0, w)),
            pl.BlockSpec((C, Cr), lambda b, w: (0, 0)),
            pl.BlockSpec((1, Cr), lambda b, w: (0, 0)),
            pl.BlockSpec((Cr, C), lambda b, w: (0, 0)),
            pl.BlockSpec((1, C), lambda b, w: (0, 0)),
        ],
        out_specs=pl.BlockSpec((1, C, 1), lambda b, w: (b, 0, 0)),
        compiler_params=pltpu.CompilerParams(
            dimension_semantics=("parallel", "arbitrary"),
            vmem_limit_bytes=vmem_limit),
    )(x, w1t, b1r, w2t, b2r)

    return pl.pallas_call(
        _fb_scale_kernel,
        out_shape=jax.ShapeDtypeStruct((B, C, W), x.dtype),
        grid=(B, nw),
        in_specs=[
            pl.BlockSpec((1, C, 1), lambda b, w: (b, 0, 0)),
            pl.BlockSpec((1, C, tw), lambda b, w: (b, 0, w)),
        ],
        out_specs=pl.BlockSpec((1, C, tw), lambda b, w: (b, 0, w)),
        compiler_params=pltpu.CompilerParams(
            dimension_semantics=("parallel", "parallel"),
            vmem_limit_bytes=vmem_limit),
    )(gate, x)


# ---------------------------------------------------------------------------
# Public wrapper (dispatch + parameter prep)
# ---------------------------------------------------------------------------

def channel_se_layer(x, w1, b1, w2, b2, *, vmem_budget_bytes=None,
                     vmem_limit_bytes=None):
    """ChannelSELayer.forward.  x: (B, C, W); w1: (Cr, C); b1: (Cr,);
    w2: (C, Cr); b2: (C,)."""
    B, C, W = x.shape
    Cr = w1.shape[0]
    it = x.dtype.itemsize

    budget, limit = _vmem_budgets()
    if vmem_budget_bytes is not None:
        budget = vmem_budget_bytes
    if vmem_limit_bytes is not None:
        limit = vmem_limit_bytes

    # Parameter prep (plain JAX glue): transpose so the kernels compute
    # sq @ w1t and z1 @ w2t, and fold the mean's 1/W into w1t so the kernels
    # only need a raw sum over W.
    w1t = jnp.asarray(w1, jnp.float32).T / jnp.float32(W)             # (C, Cr)
    w2t = jnp.asarray(w2, jnp.float32).T                              # (Cr, C)
    b1r = jnp.asarray(b1, jnp.float32).reshape(1, Cr)
    b2r = jnp.asarray(b2, jnp.float32).reshape(1, C)

    weights_bytes = 2 * (_padded_bytes(C, Cr, 4) + _padded_bytes(1, Cr, 4)
                         + _padded_bytes(Cr, C, 4) + _padded_bytes(1, C, 4))

    # Path B: lane-dense collapsed layout when W is lane-unfriendly, the MXU
    # squeeze/broadcast stays cheap (~2*C MACs/element), and the 0/1 matrices
    # fit comfortably in VMEM.
    CW = C * W
    s_bytes = _padded_bytes(CW, C, it) + _padded_bytes(C, CW, it)
    if (W % 128 != 0) and (C <= 128) and (2 * s_bytes <= budget // 4):
        row_n = _round_up(CW, 128) * it
        row_f = _round_up(CW, 128) * 4
        tb = _pick_tb(B, row_n, row_f, weights_bytes + 2 * s_bytes, budget)
        if 0 < tb < B:
            tb = (tb // 8) * 8        # 2nd-to-last block dim: x8 or full extent
        if tb > 0:
            return _se_collapsed(x, w1t, b1r, w2t, b2r, tb, limit)

    # Path A: batch-tiled 3-D blocks.
    row_n = _padded_bytes(C, W, it)
    row_f = _padded_bytes(C, W, 4)
    tb = _pick_tb(B, row_n, row_f, weights_bytes, budget)
    if tb > 0:
        return _se_batched(x, w1t, b1r, w2t, b2r, tb, limit)

    # Path C: even a single batch row exceeds the budget -> two-pass, W-tiled.
    return _se_two_pass(x, w1t, b1r, w2t, b2r, budget, limit, weights_bytes)


# ---------------------------------------------------------------------------
# Reference + tests
# ---------------------------------------------------------------------------

def _reference(x, w1, b1, w2, b2):
    sq = x.mean(-1)
    z1 = jax.nn.relu(sq @ w1.T + b1)
    z2 = jax.nn.sigmoid(z1 @ w2.T + b2)
    return x * z2[:, :, None]


def _run_case(key, B, C, W, ratio, **kwargs):
    Cr = max(1, C // ratio)
    kx, k1, k2, k3, k4 = jax.random.split(key, 5)
    x = jax.random.normal(kx, (B, C, W), dtype=jnp.float32)
    bound1 = 1.0 / (C ** 0.5)
    bound2 = 1.0 / (Cr ** 0.5)
    w1 = jax.random.uniform(k1, (Cr, C), minval=-bound1, maxval=bound1)
    b1 = jax.random.uniform(k2, (Cr,), minval=-bound1, maxval=bound1)
    w2 = jax.random.uniform(k3, (C, Cr), minval=-bound2, maxval=bound2)
    b2 = jax.random.uniform(k4, (C,), minval=-bound2, maxval=bound2)

    out = jax.block_until_ready(channel_se_layer(x, w1, b1, w2, b2, **kwargs))
    ref = _reference(x, w1, b1, w2, b2)
    assert out.shape == (B, C, W)
    assert jnp.allclose(out, ref, atol=1e-5, rtol=1e-5), (B, C, W)


if __name__ == "__main__":
    key = jax.random.PRNGKey(0)
    k0, k1, k2 = jax.random.split(key, 3)
    # Module config from the spec: num_channels=8, reduction_ratio=4 (Cr=2).
    # Small W (not a multiple of 128) -> lane-dense collapsed path (Path B).
    _run_case(k0, 2, 8, 16, 4)
    # W a multiple of 128 -> batch-tiled 3-D path (Path A).
    _run_case(k1, 4, 16, 128, 4)
    # Tiny forced tiling budget -> W-tiled two-pass fallback (Path C), with a
    # ragged last W block to exercise the in-kernel masking.
    _run_case(k2, 2, 8, 320, 4, vmem_budget_bytes=64 * 1024)
    print("KERNEL_OK")
</pallas_src>

<mosaic_0001>
module attributes {stable_mosaic.version = 11 : i64} {
  func.func @_se2d_kernel(%arg0: i32, %arg1: memref<2x128xf32, #tpu.memory_space<vmem>>, %arg2: memref<128x8xf32, #tpu.memory_space<vmem>>, %arg3: memref<8x128xf32, #tpu.memory_space<vmem>>, %arg4: memref<8x2xf32, #tpu.memory_space<vmem>>, %arg5: memref<1x2xf32, #tpu.memory_space<vmem>>, %arg6: memref<2x8xf32, #tpu.memory_space<vmem>>, %arg7: memref<1x8xf32, #tpu.memory_space<vmem>>, %arg8: memref<2x128xf32, #tpu.memory_space<vmem>>) attributes {dimension_semantics = [#tpu.dimension_semantics<parallel>], iteration_bounds = array<i64: 1>, scalar_prefetch = 0 : i64, scratch_operands = 0 : i64, tpu.core_type = #tpu.core_type<tc>, window_params = [{transform_indices = @transform_0, window_bounds = array<i64: 2, 128>}, {pipeline_mode = #tpu.pipeline_mode<synchronous>, transform_indices = @transform_1, window_bounds = array<i64: 128, 8>}, {pipeline_mode = #tpu.pipeline_mode<synchronous>, transform_indices = @transform_2, window_bounds = array<i64: 8, 128>}, {pipeline_mode = #tpu.pipeline_mode<synchronous>, transform_indices = @transform_3, window_bounds = array<i64: 8, 2>}, {pipeline_mode = #tpu.pipeline_mode<synchronous>, transform_indices = @transform_4, window_bounds = array<i64: 1, 2>}, {pipeline_mode = #tpu.pipeline_mode<synchronous>, transform_indices = @transform_5, window_bounds = array<i64: 2, 8>}, {pipeline_mode = #tpu.pipeline_mode<synchronous>, transform_indices = @transform_6, window_bounds = array<i64: 1, 8>}, {transform_indices = @transform_7, window_bounds = array<i64: 2, 128>}]} {
    %c0 = arith.constant 0 : index
    %c0_0 = arith.constant 0 : index
    %0 = vector.load %arg1[%c0, %c0_0] : memref<2x128xf32, #tpu.memory_space<vmem>>, vector<2x128xf32>
    %c0_1 = arith.constant 0 : index
    %c0_2 = arith.constant 0 : index
    %1 = vector.load %arg2[%c0_1, %c0_2] : memref<128x8xf32, #tpu.memory_space<vmem>>, vector<128x8xf32>
    %cst = arith.constant dense<0.000000e+00> : vector<2x8xf32>
    %2 = tpu.matmul %0, %1, %cst {dimension_numbers = #tpu.dot_dimension_numbers<[1], [0], [0], [1], [0, 0, 1, 1], [], []>} : vector<2x128xf32>, vector<128x8xf32>, vector<2x8xf32> -> vector<2x8xf32>
    %c0_3 = arith.constant 0 : index
    %c0_4 = arith.constant 0 : index
    %3 = vector.load %arg4[%c0_3, %c0_4] : memref<8x2xf32, #tpu.memory_space<vmem>>, vector<8x2xf32>
    %cst_5 = arith.constant dense<0.000000e+00> : vector<2x2xf32>
    %4 = tpu.matmul %2, %3, %cst_5 {dimension_numbers = #tpu.dot_dimension_numbers<[1], [0], [0], [1], [0, 0, 1, 1], [], []>} : vector<2x8xf32>, vector<8x2xf32>, vector<2x2xf32> -> vector<2x2xf32>
    %c0_6 = arith.constant 0 : index
    %c0_7 = arith.constant 0 : index
    %5 = vector.load %arg5[%c0_6, %c0_7] : memref<1x2xf32, #tpu.memory_space<vmem>>, vector<1x2xf32>
    %6 = vector.broadcast %5 : vector<1x2xf32> to vector<2x2xf32>
    %7 = arith.addf %4, %6 : vector<2x2xf32>
    %cst_8 = arith.constant 0.000000e+00 : f32
    %8 = vector.broadcast %cst_8 : f32 to vector<2x2xf32>
    %9 = arith.maximumf %7, %8 : vector<2x2xf32>
    %c0_9 = arith.constant 0 : index
    %c0_10 = arith.constant 0 : index
    %10 = vector.load %arg6[%c0_9, %c0_10] : memref<2x8xf32, #tpu.memory_space<vmem>>, vector<2x8xf32>
    %cst_11 = arith.constant dense<0.000000e+00> : vector<2x8xf32>
    %11 = tpu.matmul %9, %10, %cst_11 {dimension_numbers = #tpu.dot_dimension_numbers<[1], [0], [0], [1], [0, 0, 1, 1], [], []>} : vector<2x2xf32>, vector<2x8xf32>, vector<2x8xf32> -> vector<2x8xf32>
    %c0_12 = arith.constant 0 : index
    %c0_13 = arith.constant 0 : index
    %12 = vector.load %arg7[%c0_12, %c0_13] : memref<1x8xf32, #tpu.memory_space<vmem>>, vector<1x8xf32>
    %13 = vector.broadcast %12 : vector<1x8xf32> to vector<2x8xf32>
    %14 = arith.addf %11, %13 : vector<2x8xf32>
    %15 = arith.negf %14 : vector<2x8xf32>
    %16 = math.exp %15 : vector<2x8xf32>
    %cst_14 = arith.constant 1.000000e+00 : f32
    %17 = vector.broadcast %cst_14 : f32 to vector<2x8xf32>
    %18 = arith.addf %17, %16 : vector<2x8xf32>
    %19 = arith.divf %17, %18 : vector<2x8xf32>
    %c0_15 = arith.constant 0 : index
    %c0_16 = arith.constant 0 : index
    %20 = vector.load %arg3[%c0_15, %c0_16] : memref<8x128xf32, #tpu.memory_space<vmem>>, vector<8x128xf32>
    %cst_17 = arith.constant dense<0.000000e+00> : vector<2x128xf32>
    %21 = tpu.matmul %19, %20, %cst_17 {dimension_numbers = #tpu.dot_dimension_numbers<[1], [0], [0], [1], [0, 0, 1, 1], [], []>} : vector<2x8xf32>, vector<8x128xf32>, vector<2x128xf32> -> vector<2x128xf32>
    %c0_18 = arith.constant 0 : index
    %c0_19 = arith.constant 0 : index
    %22 = vector.load %arg1[%c0_18, %c0_19] : memref<2x128xf32, #tpu.memory_space<vmem>>, vector<2x128xf32>
    %23 = arith.mulf %22, %21 : vector<2x128xf32>
    %c0_20 = arith.constant 0 : index
    %c0_21 = arith.constant 0 : index
    %24 = vector.load %arg8[%c0_20, %c0_21] : memref<2x128xf32, #tpu.memory_space<vmem>>, vector<2x128xf32>
    tpu.vector_store %arg8[%c0_20, %c0_21], %23 {strides = array<i32>} : memref<2x128xf32, #tpu.memory_space<vmem>>, vector<2x128xf32>,
    return
  }
  func.func @transform_0(%arg0: i32) -> (i32, i32) {
    %c0_i32 = arith.constant 0 : i32
    %c0_i32_0 = arith.constant 0 : i32
    return %arg0, %c0_i32 : i32, i32
  }
  func.func @transform_1(%arg0: i32) -> (i32, i32) {
    %c0_i32 = arith.constant 0 : i32
    %c0_i32_0 = arith.constant 0 : i32
    %c0_i32_1 = arith.constant 0 : i32
    return %c0_i32, %c0_i32_0 : i32, i32
  }
  func.func @transform_2(%arg0: i32) -> (i32, i32) {
    %c0_i32 = arith.constant 0 : i32
    %c0_i32_0 = arith.constant 0 : i32
    %c0_i32_1 = arith.constant 0 : i32
    return %c0_i32, %c0_i32_0 : i32, i32
  }
  func.func @transform_3(%arg0: i32) -> (i32, i32) {
    %c0_i32 = arith.constant 0 : i32
    %c0_i32_0 = arith.constant 0 : i32
    %c0_i32_1 = arith.constant 0 : i32
    return %c0_i32, %c0_i32_0 : i32, i32
  }
  func.func @transform_4(%arg0: i32) -> (i32, i32) {
    %c0_i32 = arith.constant 0 : i32
    %c0_i32_0 = arith.constant 0 : i32
    %c0_i32_1 = arith.constant 0 : i32
    return %c0_i32, %c0_i32_0 : i32, i32
  }
  func.func @transform_5(%arg0: i32) -> (i32, i32) {
    %c0_i32 = arith.constant 0 : i32
    %c0_i32_0 = arith.constant 0 : i32
    %c0_i32_1 = arith.constant 0 : i32
    return %c0_i32, %c0_i32_0 : i32, i32
  }
  func.func @transform_6(%arg0: i32) -> (i32, i32) {
    %c0_i32 = arith.constant 0 : i32
    %c0_i32_0 = arith.constant 0 : i32
    %c0_i32_1 = arith.constant 0 : i32
    return %c0_i32, %c0_i32_0 : i32, i32
  }
  func.func @transform_7(%arg0: i32) -> (i32, i32) {
    %c0_i32 = arith.constant 0 : i32
    %c0_i32_0 = arith.constant 0 : i32
    return %arg0, %c0_i32 : i32, i32
  }
}

</mosaic_0001>

<bundles_post_ra>
// kernel: tpu_custom_call.1
= control target key start
LH: loop header
LB: loop body
LE: loop exit
PB: predicated region body
PF: predicated region fallthrough
CT: control target
= control target key end

     0   :  { %v488_v1 = vmov 0.0   ;;  %vm489_vm0 = vmmov 0   ;;  %s629_s0 = inlined_call_operand.vmem [shape: f32[2,128], index: 0, kind: input, shape index: {}]   ;;  %s630_s1 = inlined_call_operand.vmem [shape: f32[128,8], index: 1, kind: input, shape index: {}]   ;;  %s631_s2 = inlined_call_operand.vmem [shape: f32[8,128], index: 2, kind: input, shape index: {}]   ;;  %s632_s3 = inlined_call_operand.vmem [shape: f32[8,2], index: 3, kind: input, shape index: {}]   ;;  %s633_s4 = inlined_call_operand.vmem [shape: f32[1,2], index: 4, kind: input, shape index: {}]   ;;  %s634_s5 = inlined_call_operand.vmem [shape: f32[2,8], index: 5, kind: input, shape index: {}]   ;;  %s635_s6 = inlined_call_operand.vmem [shape: f32[1,8], index: 6, kind: input, shape index: {}]   ;;  %s636_s7 = inlined_call_operand.hbm [shape: f32[2,128], index: 7, kind: output, shape index: {}]  }
   0x1   :  { %v43_v0 = vld [vmem:[%s630_s1 + $0x78] sm:$0xff]  ;;  %409 = vmatprep.subr.mxu0 %v488_v1  ;;  %v42_v2 = vld [vmem:[%s630_s1 + $0x70] sm:$0xff]  ;;  %441 = vmatprep.mubr.msk.f32.mxu0 %vm489_vm0, %v488_v1  ;;  %v41_v3 = vld [vmem:[%s630_s1 + $0x68] sm:$0xff] }
   0x2   :  { %410 = vmatpush3.msra.mxu0 %v43_v0  ;;  %444 = vmatprep.subr.mxu1 %v488_v1  ;;  %v40_v4 = vld [vmem:[%s630_s1 + $0x60] sm:$0xff] }
   0x3   :  { %411 = vmatprep.subr.mxu0 %v488_v1  ;;  %446 = vmatprep.mubr.msk.f32.mxu1 %vm489_vm0, %v488_v1 }
   0x4   :  { %412 = vmatpush3.msra.mxu0 %v42_v2 }
   0x5   :  { %413 = vmatprep.subr.mxu0 %v488_v1 }
   0x6   :  { %12 = vsyncpa [#allocation3], 0  ;;  %414 = vmatpush3.msra.mxu0 %v41_v3  ;;  %v39_v5 = vld [vmem:[%s630_s1 + $0x58] sm:$0xff]  ;;  %v38_v6 = vld [vmem:[%s630_s1 + $0x50] sm:$0xff]  ;;  %vm122_vm1 = vcmask 64512   ;;  %vm209_vm2 = vcmask 1041408  }
   0x7   :  { %415 = vmatprep.subr.mxu0 %v488_v1  ;;  %v37_v7 = vld [vmem:[%s630_s1 + $0x48] sm:$0xff]  ;;  %v36_v8 = vld [vmem:[%s630_s1 + $0x40] sm:$0xff]  ;;  %v35_v9 = vld [vmem:[%s630_s1 + $0x38] sm:$0xff]  ;;  %vm205_vm3 = vcmask 15360  }
   0x8   :  { %416 = vmatpush3.msra.mxu0 %v40_v4  ;;  %v34_v10 = vld [vmem:[%s630_s1 + $0x30] sm:$0xff]  ;;  %v33_v11 = vld [vmem:[%s630_s1 + $0x28] sm:$0xff]  ;;  %v32_v12 = vld [vmem:[%s630_s1 + $0x20] sm:$0xff] }
   0x9   :  { %417 = vmatprep.subr.mxu0 %v488_v1  ;;  %v31_v13 = vld [vmem:[%s630_s1 + $0x18] sm:$0xff]  ;;  %v30_v14 = vld [vmem:[%s630_s1 + $0x10] sm:$0xff]  ;;  %v29_v15 = vld [vmem:[%s630_s1 + $0x8] sm:$0xff] }
   0xa   :  { %418 = vmatpush3.msra.mxu0 %v39_v5  ;;  %v28_v16 = vld [vmem:[%s630_s1] sm:$0xff] }
   0xb   :  { %419 = vmatprep.subr.mxu0 %v488_v1  ;;  %v27_v17 = vld [vmem:[%s629_s0] sm:$0x3] }
   0xc   :  { %420 = vmatpush3.msra.mxu0 %v38_v6  ;;  %v114_v18 = vld [vmem:[%s632_s3] sm:$0xff] }
   0xd   :  { %421 = vmatprep.subr.mxu0 %v488_v1  ;;  %445 = vmatpush3.msra.mxu1 %v114_v18  ;;  %v197_v21 = vld [vmem:[%s634_s5] sm:$0x3] }
   0xe   :  { %422 = vmatpush3.msra.mxu0 %v37_v7  ;;  %449 = vmatprep.subr.mxu1 %v488_v1  ;;  %v379_v22 = vld [vmem:[%s633_s4] ss:$0 sm:$0xff]  ;;  %s490_s4 = smov [#allocation2]  }
   0xf   :  { %423 = vmatprep.subr.mxu0 %v488_v1  ;;  %v289_v27 = vld [vmem:[%s631_s2] sm:$0xff]  ;;  %s371_s18 = sshll.u32 %s490_s4, 4  ;;  %s372_s18 = int_to_ptr.vmem [resolvable:$true] %s371_s18 }
  0x10   :  { %424 = vmatpush3.msra.mxu0 %v36_v8  ;;  %v381_v28 = vld [vmem:[%s635_s6] ss:$0 sm:$0xff]  ;;  %s466_s2 = scalar_lea.vmem %s372_s18, 32  ;;  %p471_p1 = scmp.lt.s32.totalorder %s372_s18, %s372_s18 }
  0x11   :  { %425 = vmatprep.subr.mxu0 %v488_v1  ;;  %p467_p0 = scmp.ne.s32.totalorder %s372_s18, %s466_s2  ;;  %p472_p2 = scmp.lt.s32.totalorder %s466_s2, %s466_s2 }
  0x12   :  { %426 = vmatpush3.msra.mxu0 %v35_v9 }
  0x13   :  { %427 = vmatprep.subr.mxu0 %v488_v1  ;;  %p473_p3 = por %p472_p2, %p471_p1 }
  0x14   :  { %428 = vmatpush3.msra.mxu0 %v34_v10 }
  0x15   :  { %429 = vmatprep.subr.mxu0 %v488_v1  ;;  %p474_p4 = pnand %p473_p3, %p467_p0 }
  0x16   :  { %430 = vmatpush3.msra.mxu0 %v33_v11 }
  0x17   :  { %431 = vmatprep.subr.mxu0 %v488_v1 }
  0x18   :  { %432 = vmatpush3.msra.mxu0 %v32_v12 }
  0x19   :  { %433 = vmatprep.subr.mxu0 %v488_v1 }
  0x1a   :  { %434 = vmatpush3.msra.mxu0 %v31_v13 }
  0x1b   :  { %435 = vmatprep.subr.mxu0 %v488_v1 }
  0x1c   :  { %436 = vmatpush3.msra.mxu0 %v30_v14 }
  0x1d   :  { %437 = vmatprep.subr.mxu0 %v488_v1 }
  0x1e   :  { %438 = vmatpush3.msra.mxu0 %v29_v15 }
  0x1f   :  { %439 = vmatprep.subr.mxu0 %v488_v1 }
  0x20   :  { %440 = vmatpush3.msra.mxu0 %v28_v16 }
  0x21   :  { %442 = vmatmul.mubr.f32.vlgmr.msra.gmra.mxu0 %v27_v17 }
  0xe1   :  { %v110_v19 = vpop.f32.mrf.mxu0 }
  0xe2   :  { %447 = vmatmul.mubr.msk.f32.vlgmr.msra.gmra.mxu1 %vm122_vm1, %v110_v19 }
  0xe3   :  { %v443_v20 = vpop.f32.mrf.mxu0  ;;  %451 = vmatprep.mubr.msk.f32.mxu1 %vm489_vm0, %v488_v1  ;;  %450 = vmatpush3.msk.msra.mxu1 %vm209_vm2, %v197_v21 }
  0xe4   :  { %454 = vmatprep.subr.mxu1 %v488_v1 }
 0x1a2   :  { %v192_v23 = vpop.f32.mrf.mxu1 }
 0x1a3   :  { %v193_v24 = vadd.f32 %v379_v22, %v192_v23 }
 0x1a4   :  { %v448_v25 = vpop.f32.mrf.mxu1 }
 0x1a5   :  { %v196_v26 = vmax.f32 %v193_v24, 0.0 }
 0x1a7   :  { %452 = vmatmul.mubr.msk.f32.vlgmr.msra.gmra.mxu1 %vm205_vm3, %v196_v26 }
 0x1a8   :  { %456 = vmatprep.mubr.msk.f32.mxu1 %vm489_vm0, %v488_v1  ;;  %455 = vmatpush3.msra.mxu1 %v289_v27 }
 0x267   :  { %v279_v29 = vpop.f32.mrf.mxu1 }
 0x268   :  { %v280_v30 = vadd.f32 %v381_v28, %v279_v29 }
 0x269   :  { %v453_v31 = vpop.f32.mrf.mxu1 }
 0x26a   :  { %v384_v32 = vmul.f32 -1.442695, %v280_v30 }
 0x26c   :  { %462 = vpow2.f32 %v384_v32 }
 0x279   :  { %v463_v33 = vpop.eup %462 }
 0x27a   :  { %v286_v34 = vadd.f32 1.0, %v463_v33 }
 0x27c   :  { %464 = vrcp.f32 %v286_v34 }
 0x289   :  { %v465_v35 = vpop.eup %464 }
 0x28a   :  { %457 = vmatmul.mubr.msk.f32.vlgmr.msra.gmra.mxu1 %vm122_vm1, %v465_v35 }
 0x34a   :  { %v359_v36 = vpop.f32.mrf.mxu1 }
 0x34b   :  { %v363_v37 = vmul.f32 %v359_v36, %v27_v17 }
 0x34c   :  { %v458_v38 = vpop.f32.mrf.mxu1 }
 0x34d   :  { %364 = vst [vmem:[#allocation2] sm:$0x3] %v363_v37 }
 0x34e   :  { %477 = shalt.err (!%p474_p4)
}
 0x34f   :  { %374 = dma.vmem_to_hbm [thread:$0]  %s372_s18, 32, %s636_s7, [#allocation3]  }
 0x350   :  { %486 = dma.done.wait [#allocation3], 32  }
 0x351   :  { %487 = vsyncadd [#allocation3], 4294967264 }
 0x352   :  { %378 = vsyncpa [#allocation3], 1 }

</bundles_post_ra>
